<compile_context>
chip_gen: v5e
topology: v5e:2x2
jax: 0.10.0
libtpu: 0.0.40
codegen_flags: <defaults>
</compile_context>

<pallas_src>
import functools
import math

import jax
import jax.numpy as jnp
from jax.experimental import pallas as pl
from jax.experimental.pallas import tpu as pltpu


# ---------------------------------------------------------------------------
# PE table construction (matches the PyTorch __init__ exactly).
# ---------------------------------------------------------------------------
def build_sinusoidal_pe(max_len: int, dim: int) -> jnp.ndarray:
    if dim % 2 != 0:
        raise ValueError(
            f"Cannot use sin/cos positional encoding with odd dim (got dim={dim})")
    position = jnp.arange(0, max_len, dtype=jnp.float32)[:, None]            # (max_len, 1)
    div_term = jnp.exp(jnp.arange(0, dim, 2, dtype=jnp.float32)
                       * -(math.log(10000.0) / dim))                          # (dim//2,)
    pe = jnp.zeros((max_len, dim), dtype=jnp.float32)
    pe = pe.at[:, 0::2].set(jnp.sin(position * div_term))
    pe = pe.at[:, 1::2].set(jnp.cos(position * div_term))
    return pe                                                                 # (max_len, dim)


# ---------------------------------------------------------------------------
# Kernel (shared by both tiling paths).
# ---------------------------------------------------------------------------
def _pe_kernel(emb_ref, pe_ref, out_ref, *, scale):
    # emb_ref / out_ref: (bb, tn, D) activation-dtype blocks; pe_ref: (tn, D) float32.
    x = emb_ref[...].astype(jnp.float32) * scale + pe_ref[...][None, :, :]
    out_ref[...] = x.astype(out_ref.dtype)


# ---------------------------------------------------------------------------
# Helpers.
# ---------------------------------------------------------------------------
def _sublane_quantum(dtype) -> int:
    # Packed sublane count: 8 rows for 32-bit, 16 for bf16/fp16, 32 for int8/fp8.
    return max(8, 32 // jnp.dtype(dtype).itemsize)


def _vmem_cap_bytes() -> int:
    # Scoped-VMEM ceiling per generation: ~half of physical, capped at 64 MiB.
    try:
        physical = pltpu.get_tpu_info().vmem_capacity_bytes
    except Exception:  # interpret mode / older runtimes
        physical = 64 << 20
    return int(min(64 << 20, max(16 << 20, physical // 2)))


def _cost(b, n, d, itemsize):
    # Pure bandwidth op: read emb once, write out once, read PE once (grid-reorder / resident PE).
    return pl.CostEstimate(
        flops=2 * b * n * d,
        transcendentals=0,
        bytes_accessed=2 * b * n * d * itemsize + n * d * 4,
    )


# ---------------------------------------------------------------------------
# Wrapper.
# ---------------------------------------------------------------------------
def positional_encoding(emb: jnp.ndarray, pe_table: jnp.ndarray,
                        *, target_block_bytes: int = 2 << 20) -> jnp.ndarray:
    """emb: (B, N, D); pe_table: (max_len, D) float32. Returns (B, N, D) in emb.dtype."""
    B, N, D = emb.shape
    assert N <= pe_table.shape[0], "sequence length exceeds max_len"

    pe_slice = pe_table[:N, :]                    # (N, D) float32 (kept f32 for fidelity)
    scale = float(math.sqrt(D))
    itemsize = jnp.dtype(emb.dtype).itemsize
    q = _sublane_quantum(emb.dtype)
    row_bytes = D * itemsize
    cap = _vmem_cap_bytes()
    cost = _cost(B, N, D, itemsize)
    kernel = functools.partial(_pe_kernel, scale=scale)

    # --- Path A: small N*D -> fold batch into the block; PE fully VMEM-resident (fetched once).
    if N * row_bytes <= target_block_bytes:
        bb = max(1, min(B, target_block_bytes // max(1, N * row_bytes)))
        nb = pl.cdiv(B, bb)
        block_bytes = bb * N * row_bytes
        pe_bytes = N * D * 4
        vmem_limit = int(min(cap, max(16 << 20, 4 * block_bytes + 2 * pe_bytes + (4 << 20))))
        return pl.pallas_call(
            kernel,
            out_shape=jax.ShapeDtypeStruct((B, N, D), emb.dtype),
            grid_spec=pltpu.PrefetchScalarGridSpec(
                num_scalar_prefetch=0,
                grid=(nb,),
                in_specs=[
                    pl.BlockSpec((bb, N, D), lambda i: (i, 0, 0)),
                    # Constant block index -> Pallas fetches PE once for the whole kernel.
                    pl.BlockSpec((N, D), lambda i: (0, 0)),
                ],
                out_specs=pl.BlockSpec((bb, N, D), lambda i: (i, 0, 0)),
            ),
            compiler_params=pltpu.CompilerParams(
                dimension_semantics=("parallel",),
                vmem_limit_bytes=vmem_limit,
            ),
            cost_estimate=cost,
        )(emb, pe_slice)

    # --- Path B: tile the sequence axis. Grid is (nblk, B) with batch innermost so the PE
    #     block index (s, 0) is constant across consecutive steps (re-DMA skipped).
    if N <= q:
        tn = N                                    # full-dim block, no sublane constraint
    else:
        tn_budget = max(q, (target_block_bytes // max(1, row_bytes)) // q * q)
        tn = min(tn_budget, (N // q) * q)         # ragged tail (N % tn) handled by masking
    nblk = pl.cdiv(N, tn)
    block_bytes = tn * row_bytes
    pe_block_bytes = tn * D * 4
    vmem_limit = int(min(cap, max(16 << 20, 4 * block_bytes + 2 * pe_block_bytes + (4 << 20))))

    return pl.pallas_call(
        kernel,
        out_shape=jax.ShapeDtypeStruct((B, N, D), emb.dtype),
        grid_spec=pltpu.PrefetchScalarGridSpec(
            num_scalar_prefetch=0,
            grid=(nblk, B),
            in_specs=[
                pl.BlockSpec((1, tn, D), lambda s, b: (b, s, 0)),
                pl.BlockSpec((tn, D), lambda s, b: (s, 0)),   # constant over inner batch axis
            ],
            out_specs=pl.BlockSpec((1, tn, D), lambda s, b: (b, s, 0)),
        ),
        compiler_params=pltpu.CompilerParams(
            dimension_semantics=("parallel", "parallel"),
            vmem_limit_bytes=vmem_limit,
        ),
        cost_estimate=cost,
    )(emb, pe_slice)


if __name__ == "__main__":
    # --- Demo shape consistent with the module: batch=2, seq=8, dim=32, max_len=22.
    B, N, D, MAX_LEN = 2, 8, 32, 22
    DROPOUT_P = 0.1  # identity at eval time

    key = jax.random.PRNGKey(0)
    emb = jax.random.normal(key, (B, N, D), dtype=jnp.float32)
    pe_table = build_sinusoidal_pe(MAX_LEN, D)

    out = jax.block_until_ready(positional_encoding(emb, pe_table))
    ref = emb * math.sqrt(D) + pe_table[None, :N, :]
    assert out.shape == (B, N, D)
    assert jnp.allclose(out, ref, atol=1e-5, rtol=1e-5), "mismatch (batch-folded path)"

    # --- Ragged N (not a multiple of 8), batch-folded path, max_len=22 as in the module.
    B2, N2, D2 = 5, 19, 64
    emb2 = jax.random.normal(jax.random.PRNGKey(0), (B2, N2, D2), dtype=jnp.float32)
    pe_table2 = build_sinusoidal_pe(22, D2)
    out2 = jax.block_until_ready(positional_encoding(emb2, pe_table2))
    ref2 = emb2 * math.sqrt(D2) + pe_table2[None, :N2, :]
    assert jnp.allclose(out2, ref2, atol=1e-5, rtol=1e-5), "mismatch (ragged-N path)"

    # --- Sequence-tiled path with a ragged tail, forced via a tiny block budget so the demo
    #     stays small (tn=16, nblk=3, grid=(3, 3), PE fetched once per sequence block).
    B3, N3, D3 = 3, 40, 128
    emb3 = jax.random.normal(jax.random.PRNGKey(0), (B3, N3, D3), dtype=jnp.float32)
    pe_table3 = build_sinusoidal_pe(64, D3)
    out3 = jax.block_until_ready(
        positional_encoding(emb3, pe_table3, target_block_bytes=8192))
    ref3 = emb3 * math.sqrt(D3) + pe_table3[None, :N3, :]
    assert jnp.allclose(out3, ref3, atol=1e-4, rtol=1e-5), "mismatch (seq-tiled path)"

    print("KERNEL_OK")
</pallas_src>

<mosaic_0001>
module attributes {stable_mosaic.version = 11 : i64} {
  func.func @_pe_kernel(%arg0: i32, %arg1: memref<2x8x32xf32, #tpu.memory_space<vmem>>, %arg2: memref<8x32xf32, #tpu.memory_space<vmem>>, %arg3: memref<2x8x32xf32, #tpu.memory_space<vmem>>) attributes {dimension_semantics = [#tpu.dimension_semantics<parallel>], iteration_bounds = array<i64: 1>, scalar_prefetch = 0 : i64, scratch_operands = 0 : i64, tpu.core_type = #tpu.core_type<tc>, window_params = [{transform_indices = @transform_0, window_bounds = array<i64: 2, 8, 32>}, {pipeline_mode = #tpu.pipeline_mode<synchronous>, transform_indices = @transform_1, window_bounds = array<i64: 8, 32>}, {transform_indices = @transform_2, window_bounds = array<i64: 2, 8, 32>}]} {
    %c0 = arith.constant 0 : index
    %c0_0 = arith.constant 0 : index
    %c0_1 = arith.constant 0 : index
    %0 = vector.load %arg1[%c0, %c0_0, %c0_1] : memref<2x8x32xf32, #tpu.memory_space<vmem>>, vector<2x8x32xf32>
    %cst = arith.constant 5.65685415 : f32
    %1 = vector.broadcast %cst : f32 to vector<2x8x32xf32>
    %2 = arith.mulf %0, %1 : vector<2x8x32xf32>
    %c0_2 = arith.constant 0 : index
    %c0_3 = arith.constant 0 : index
    %3 = vector.load %arg2[%c0_2, %c0_3] : memref<8x32xf32, #tpu.memory_space<vmem>>, vector<8x32xf32>
    %4 = vector.shape_cast %3 : vector<8x32xf32> to vector<1x8x32xf32>
    %5 = vector.broadcast %4 : vector<1x8x32xf32> to vector<2x8x32xf32>
    %6 = arith.addf %2, %5 : vector<2x8x32xf32>
    %c0_4 = arith.constant 0 : index
    %c0_5 = arith.constant 0 : index
    %c0_6 = arith.constant 0 : index
    %7 = vector.load %arg3[%c0_4, %c0_5, %c0_6] : memref<2x8x32xf32, #tpu.memory_space<vmem>>, vector<2x8x32xf32>
    tpu.vector_store %arg3[%c0_4, %c0_5, %c0_6], %6 {strides = array<i32>} : memref<2x8x32xf32, #tpu.memory_space<vmem>>, vector<2x8x32xf32>,
    return
  }
  func.func @transform_0(%arg0: i32) -> (i32, i32, i32) {
    %c0_i32 = arith.constant 0 : i32
    %c0_i32_0 = arith.constant 0 : i32
    %c0_i32_1 = arith.constant 0 : i32
    return %arg0, %c0_i32, %c0_i32_0 : i32, i32, i32
  }
  func.func @transform_1(%arg0: i32) -> (i32, i32) {
    %c0_i32 = arith.constant 0 : i32
    %c0_i32_0 = arith.constant 0 : i32
    %c0_i32_1 = arith.constant 0 : i32
    return %c0_i32, %c0_i32_0 : i32, i32
  }
  func.func @transform_2(%arg0: i32) -> (i32, i32, i32) {
    %c0_i32 = arith.constant 0 : i32
    %c0_i32_0 = arith.constant 0 : i32
    %c0_i32_1 = arith.constant 0 : i32
    return %arg0, %c0_i32, %c0_i32_0 : i32, i32, i32
  }
}

</mosaic_0001>

<bundles_post_ra>
// kernel: tpu_custom_call.1
= control target key start
LH: loop header
LB: loop body
LE: loop exit
PB: predicated region body
PF: predicated region fallthrough
CT: control target
= control target key end

     0   :  { %7 = vsyncpa [#allocation3], 0  ;;  %s190_s0 = inlined_call_operand.hbm [shape: f32[2,8,32], index: 0, kind: input, shape index: {}]   ;;  %s191_s1 = inlined_call_operand.hbm [shape: f32[8,32], index: 1, kind: input, shape index: {}]   ;;  %s192_s2 = inlined_call_operand.hbm [shape: f32[2,8,32], index: 2, kind: output, shape index: {}]  }
   0x1   :  { %8 = vsyncpa [#allocation6], 0 }
   0x2   :  { %9 = vsyncpa [#allocation4], 0  ;;  %s14_s11 = sshll.u32 %s190_s0, 4  ;;  %s155_s12 = smov [#allocation2]   ;;  %s15_s11 = int_to_ptr.hbm [resolvable:$true] %s14_s11 }
   0x3   :  { %s16_s13 = sshll.u32 %s155_s12, 4  ;;  %s28_s16 = sshll.u32 %s191_s1, 4  ;;  %s17_s13 = int_to_ptr.vmem [resolvable:$true] %s16_s13  ;;  %s29_s16 = int_to_ptr.hbm [resolvable:$true] %s28_s16 }
   0x4   :  { %s156_s17 = smov 128   ;;  %s157_s18 = smov 8  }
   0x5   :  { %22 = dma.hbm_to_vmem [thread:$0]  %s15_s11, 256, %s17_s13, [#allocation3], %s156_s17, %s156_s17, %s157_s18  }
   0x6   :  { %s158_s19 = smov [#allocation5]  }
   0x7   :  { %s30_s20 = sshll.u32 %s158_s19, 4  ;;  %s31_s20 = int_to_ptr.vmem [resolvable:$true] %s30_s20 }
   0x8   :  { %33 = dma.hbm_to_vmem [thread:$0]  %s29_s16, 128, %s31_s20, [#allocation6]  }
   0x9   :  { %149 = dma.done.wait [#allocation3], 256  }
   0xa   :  { %150 = vsyncadd [#allocation3], 4294967040 }
   0xb   :  { %151 = dma.done.wait [#allocation6], 128  }
   0xc   :  { %152 = vsyncadd [#allocation6], 4294967168  ;;  %v42_v0 = vld [vmem:[#allocation2] sm:$0xff]  ;;  %v46_v1 = vld [vmem:[#allocation5] sm:$0xff]  ;;  %s159_s0 = smov [#allocation7]   ;;  %s58_s23 = sshll.u32 %s192_s2, 4  ;;  %s59_s23 = int_to_ptr.hbm [resolvable:$true] %s58_s23 }
   0xd   :  { %v43_v2 = vld [vmem:[#allocation2 + $0x8] sm:$0xff]  ;;  %v44_v3 = vmul.f32 5.656854, %v42_v0  ;;  %s56_s1 = sshll.u32 %s159_s0, 4  ;;  %vm49_vm0 = vcmask 261120   ;;  %s57_s1 = int_to_ptr.vmem [resolvable:$true] %s56_s1 }
   0xe   :  { %v45_v4 = vmul.f32 5.656854, %v43_v2 }
   0xf   :  { %v47_v5 = vadd.f32 %v46_v1, %v44_v3 }
  0x10   :  { %v48_v6 = vadd.f32 %v46_v1, %v45_v4 }
  0x11   :  { %50 = vst.msk [vmem:[#allocation7] sm:$0xff] %vm49_vm0, %v47_v5 }
  0x12   :  { %51 = vst.msk [vmem:[#allocation7 + $0x8] sm:$0xff] %vm49_vm0, %v48_v6 }
  0x13   :  { %64 = dma.vmem_to_hbm [thread:$0]  %s57_s1, 256, %s59_s23, [#allocation4], %s156_s17, %s156_s17, %s157_s18  }
  0x14   :  { %153 = dma.done.wait [#allocation4], 256  }
  0x15   :  { %154 = vsyncadd [#allocation4], 4294967040 }
  0x16   :  { %69 = vsyncpa [#allocation3], 1 }
  0x17   :  { %70 = vsyncpa [#allocation6], 1 }
  0x18   :  { %71 = vsyncpa [#allocation4], 1 }

</bundles_post_ra>
